<compile_context>
chip_gen: v7x
topology: tpu7x:2x2x1
jax: 0.10.0
libtpu: 0.0.40
codegen_flags: <defaults>
</compile_context>

<pallas_src>
import jax
import jax.numpy as jnp
from jax.experimental import pallas as pl
from jax.experimental.pallas import tpu as pltpu


def _round_up(x, m):
    return ((x + m - 1) // m) * m


def _latent_encoder_kernel(r_ref, wm_ref, bm_ref, wl_ref, bl_ref,
                           mean_ref, logvar_ref):
    # r_ref   : (TILE_N, r_dim)  activation row tile (native dtype)
    # w*_ref  : (r_dim, z_dim)   weights, cast once to the activation dtype
    # b*_ref  : (1, z_dim)       biases, f32 (added in the f32 accumulator)
    # outputs : (TILE_N, z_dim)  each, in the activation dtype
    x = r_ref[...]  # read the input tile once; reuse for both heads
    mean = jnp.dot(x, wm_ref[...], preferred_element_type=jnp.float32) + bm_ref[...]
    logv = jnp.dot(x, wl_ref[...], preferred_element_type=jnp.float32) + bl_ref[...]
    mean_ref[...] = mean.astype(mean_ref.dtype)
    logvar_ref[...] = logv.astype(logvar_ref.dtype)


def _pick_tile_n(n_rows, r_dim, z_dim, itemsize):
    """Row-tile size: multiple of 16, VMEM-budgeted, >=2 grid steps if possible."""
    if n_rows <= 16:
        return n_rows  # block shape == full array dims: always legal
    # Double-buffered activation + both output tiles + resident weights must
    # stay well under the smallest scoped-VMEM default (v5e: 16 MiB).
    budget = 12 * 1024 * 1024
    w_bytes = 2 * r_dim * z_dim * itemsize + 2 * z_dim * 4
    per_row = 2 * (r_dim + 2 * z_dim) * itemsize  # x2 for double buffering
    cap = max(16, (budget - w_bytes) // per_row)
    tile = min(1024, cap)
    # Keep at least 2 grid steps so both v7x TensorCores get work.
    tile = min(tile, _round_up(-(-n_rows // 2), 16))
    return max(16, _round_up(tile, 16))


def prepare_params(params, activation_dtype):
    """One-time param prep (hoisted out of the per-call forward path)."""
    w_mean, b_mean, w_logvar, b_logvar = params
    z_dim = w_mean.shape[-1]
    return (w_mean.astype(activation_dtype),
            b_mean.reshape(1, z_dim).astype(jnp.float32),
            w_logvar.astype(activation_dtype),
            b_logvar.reshape(1, z_dim).astype(jnp.float32))


def latent_encoder_forward(r_aggregated, prepared_params, *, min_pallas_rows=0):
    """r_aggregated: (..., r_dim) -> (mean, logvar), each (..., z_dim)."""
    w_mean, b_mean, w_logvar, b_logvar = prepared_params
    r_dim = r_aggregated.shape[-1]
    z_dim = w_mean.shape[-1]
    lead = r_aggregated.shape[:-1]

    x = r_aggregated.reshape(-1, r_dim)  # native dtype: no f32 upcast pass
    n_rows = x.shape[0]
    out_dtype = x.dtype

    if n_rows < min_pallas_rows:
        # Tiny problem: plain XLA beats Pallas launch + DMA setup.
        mean = (jnp.dot(x, w_mean, preferred_element_type=jnp.float32)
                + b_mean).astype(out_dtype)
        logv = (jnp.dot(x, w_logvar, preferred_element_type=jnp.float32)
                + b_logvar).astype(out_dtype)
        return mean.reshape(*lead, z_dim), logv.reshape(*lead, z_dim)

    itemsize = jnp.dtype(out_dtype).itemsize
    tile_n = _pick_tile_n(n_rows, r_dim, z_dim, itemsize)
    grid = (pl.cdiv(n_rows, tile_n),)  # ragged last block; no wrapper-side pad

    mean, logv = pl.pallas_call(
        _latent_encoder_kernel,
        out_shape=(jax.ShapeDtypeStruct((n_rows, z_dim), out_dtype),
                   jax.ShapeDtypeStruct((n_rows, z_dim), out_dtype)),
        grid=grid,
        in_specs=[
            pl.BlockSpec((tile_n, r_dim), lambda i: (i, 0)),   # activations: streamed
            pl.BlockSpec((r_dim, z_dim), lambda i: (0, 0)),    # weights: VMEM-resident
            pl.BlockSpec((1, z_dim), lambda i: (0, 0)),        # bias: VMEM-resident
            pl.BlockSpec((r_dim, z_dim), lambda i: (0, 0)),
            pl.BlockSpec((1, z_dim), lambda i: (0, 0)),
        ],
        out_specs=(pl.BlockSpec((tile_n, z_dim), lambda i: (i, 0)),
                   pl.BlockSpec((tile_n, z_dim), lambda i: (i, 0))),
        compiler_params=pltpu.CompilerParams(
            dimension_semantics=("parallel",),
        ),
    )(x, w_mean, b_mean, w_logvar, b_logvar)

    return mean.reshape(*lead, z_dim), logv.reshape(*lead, z_dim)


def init_params(key, r_dim, z_dim):
    """Deterministic init matching nn.Linear shapes (stored as (in, out))."""
    ks = jax.random.split(key, 4)
    bound = 1.0 / jnp.sqrt(r_dim)

    def linear(kw, kb):
        w = jax.random.uniform(kw, (r_dim, z_dim), jnp.float32, -bound, bound)
        b = jax.random.uniform(kb, (z_dim,), jnp.float32, -bound, bound)
        return w, b

    w_mean, b_mean = linear(ks[0], ks[1])
    w_logvar, b_logvar = linear(ks[2], ks[3])
    return (w_mean, b_mean, w_logvar, b_logvar)


def _reference(r_aggregated, params):
    w_mean, b_mean, w_logvar, b_logvar = params
    xf = r_aggregated.astype(jnp.float32)
    return (xf @ w_mean + b_mean, xf @ w_logvar + b_logvar)


if __name__ == "__main__":
    key = jax.random.PRNGKey(0)
    k_r, k_p, k_r2 = jax.random.split(key, 3)

    # Spec-implied small shapes: r_aggregated (B, r_dim) -> two (B, z_dim).
    B, r_dim, z_dim = 2, 32, 8
    params = init_params(k_p, r_dim, z_dim)
    prep_f32 = prepare_params(params, jnp.float32)

    # Case 1: tiny f32 case at the module's natural shapes (1-step grid,
    # partial block, no padding anywhere).
    r_small = jax.random.normal(k_r, (B, r_dim), jnp.float32)
    mean, logvar = latent_encoder_forward(r_small, prep_f32)
    jax.block_until_ready((mean, logvar))
    ref_mean, ref_logvar = _reference(r_small, params)
    assert mean.shape == (B, z_dim) and logvar.shape == (B, z_dim)
    assert jnp.allclose(mean, ref_mean, atol=1e-5, rtol=1e-5)
    assert jnp.allclose(logvar, ref_logvar, atol=1e-5, rtol=1e-5)

    # Case 2: ragged row count -> multi-step grid + masked last block,
    # still f32 for bit-tight validation.
    N2 = 300
    r_big = jax.random.normal(k_r2, (N2, r_dim), jnp.float32)
    mean2, logvar2 = latent_encoder_forward(r_big, prep_f32)
    jax.block_until_ready((mean2, logvar2))
    ref_mean2, ref_logvar2 = _reference(r_big, params)
    assert jnp.allclose(mean2, ref_mean2, atol=1e-5, rtol=1e-5)
    assert jnp.allclose(logvar2, ref_logvar2, atol=1e-5, rtol=1e-5)

    # Case 3: bf16 activation stream preserved end-to-end (f32 accumulation
    # inside the kernel); compare against an f32 reference built from the
    # same bf16-rounded inputs/weights.
    r_bf16 = r_big.astype(jnp.bfloat16)
    prep_bf16 = prepare_params(params, jnp.bfloat16)
    mean3, logvar3 = latent_encoder_forward(r_bf16, prep_bf16)
    jax.block_until_ready((mean3, logvar3))
    ref_params_bf = (params[0].astype(jnp.bfloat16).astype(jnp.float32), params[1],
                     params[2].astype(jnp.bfloat16).astype(jnp.float32), params[3])
    ref_mean3, ref_logvar3 = _reference(r_bf16, ref_params_bf)
    assert jnp.allclose(mean3.astype(jnp.float32), ref_mean3, atol=2e-2, rtol=2e-2)
    assert jnp.allclose(logvar3.astype(jnp.float32), ref_logvar3, atol=2e-2, rtol=2e-2)

    print("KERNEL_OK")
</pallas_src>

<mosaic_0001>
module attributes {stable_mosaic.version = 11 : i64} {
  func.func @_latent_encoder_kernel(%arg0: i32, %arg1: memref<2x32xf32, #tpu.memory_space<vmem>>, %arg2: memref<32x8xf32, #tpu.memory_space<vmem>>, %arg3: memref<1x8xf32, #tpu.memory_space<vmem>>, %arg4: memref<32x8xf32, #tpu.memory_space<vmem>>, %arg5: memref<1x8xf32, #tpu.memory_space<vmem>>, %arg6: memref<2x8xf32, #tpu.memory_space<vmem>>, %arg7: memref<2x8xf32, #tpu.memory_space<vmem>>) attributes {dimension_semantics = [#tpu.dimension_semantics<parallel>], iteration_bounds = array<i64: 1>, scalar_prefetch = 0 : i64, scratch_operands = 0 : i64, tpu.core_type = #tpu.core_type<tc>, window_params = [{transform_indices = @transform_0, window_bounds = array<i64: 2, 32>}, {pipeline_mode = #tpu.pipeline_mode<synchronous>, transform_indices = @transform_1, window_bounds = array<i64: 32, 8>}, {pipeline_mode = #tpu.pipeline_mode<synchronous>, transform_indices = @transform_2, window_bounds = array<i64: 1, 8>}, {pipeline_mode = #tpu.pipeline_mode<synchronous>, transform_indices = @transform_3, window_bounds = array<i64: 32, 8>}, {pipeline_mode = #tpu.pipeline_mode<synchronous>, transform_indices = @transform_4, window_bounds = array<i64: 1, 8>}, {transform_indices = @transform_5, window_bounds = array<i64: 2, 8>}, {transform_indices = @transform_6, window_bounds = array<i64: 2, 8>}]} {
    %c0 = arith.constant 0 : index
    %c0_0 = arith.constant 0 : index
    %0 = vector.load %arg1[%c0, %c0_0] : memref<2x32xf32, #tpu.memory_space<vmem>>, vector<2x32xf32>
    %c0_1 = arith.constant 0 : index
    %c0_2 = arith.constant 0 : index
    %1 = vector.load %arg2[%c0_1, %c0_2] : memref<32x8xf32, #tpu.memory_space<vmem>>, vector<32x8xf32>
    %cst = arith.constant dense<0.000000e+00> : vector<2x8xf32>
    %2 = tpu.matmul %0, %1, %cst {dimension_numbers = #tpu.dot_dimension_numbers<[1], [0], [0], [1], [0, 0, 1, 1], [], []>} : vector<2x32xf32>, vector<32x8xf32>, vector<2x8xf32> -> vector<2x8xf32>
    %c0_3 = arith.constant 0 : index
    %c0_4 = arith.constant 0 : index
    %3 = vector.load %arg3[%c0_3, %c0_4] : memref<1x8xf32, #tpu.memory_space<vmem>>, vector<1x8xf32>
    %4 = vector.broadcast %3 : vector<1x8xf32> to vector<2x8xf32>
    %5 = arith.addf %2, %4 : vector<2x8xf32>
    %c0_5 = arith.constant 0 : index
    %c0_6 = arith.constant 0 : index
    %6 = vector.load %arg4[%c0_5, %c0_6] : memref<32x8xf32, #tpu.memory_space<vmem>>, vector<32x8xf32>
    %cst_7 = arith.constant dense<0.000000e+00> : vector<2x8xf32>
    %7 = tpu.matmul %0, %6, %cst_7 {dimension_numbers = #tpu.dot_dimension_numbers<[1], [0], [0], [1], [0, 0, 1, 1], [], []>} : vector<2x32xf32>, vector<32x8xf32>, vector<2x8xf32> -> vector<2x8xf32>
    %c0_8 = arith.constant 0 : index
    %c0_9 = arith.constant 0 : index
    %8 = vector.load %arg5[%c0_8, %c0_9] : memref<1x8xf32, #tpu.memory_space<vmem>>, vector<1x8xf32>
    %9 = vector.broadcast %8 : vector<1x8xf32> to vector<2x8xf32>
    %10 = arith.addf %7, %9 : vector<2x8xf32>
    %c0_10 = arith.constant 0 : index
    %c0_11 = arith.constant 0 : index
    %11 = vector.load %arg6[%c0_10, %c0_11] : memref<2x8xf32, #tpu.memory_space<vmem>>, vector<2x8xf32>
    tpu.vector_store %arg6[%c0_10, %c0_11], %5 {strides = array<i32>} : memref<2x8xf32, #tpu.memory_space<vmem>>, vector<2x8xf32>,
    %c0_12 = arith.constant 0 : index
    %c0_13 = arith.constant 0 : index
    %12 = vector.load %arg7[%c0_12, %c0_13] : memref<2x8xf32, #tpu.memory_space<vmem>>, vector<2x8xf32>
    tpu.vector_store %arg7[%c0_12, %c0_13], %10 {strides = array<i32>} : memref<2x8xf32, #tpu.memory_space<vmem>>, vector<2x8xf32>,
    return
  }
  func.func @transform_0(%arg0: i32) -> (i32, i32) {
    %c0_i32 = arith.constant 0 : i32
    %c0_i32_0 = arith.constant 0 : i32
    return %arg0, %c0_i32 : i32, i32
  }
  func.func @transform_1(%arg0: i32) -> (i32, i32) {
    %c0_i32 = arith.constant 0 : i32
    %c0_i32_0 = arith.constant 0 : i32
    %c0_i32_1 = arith.constant 0 : i32
    return %c0_i32, %c0_i32_0 : i32, i32
  }
  func.func @transform_2(%arg0: i32) -> (i32, i32) {
    %c0_i32 = arith.constant 0 : i32
    %c0_i32_0 = arith.constant 0 : i32
    %c0_i32_1 = arith.constant 0 : i32
    return %c0_i32, %c0_i32_0 : i32, i32
  }
  func.func @transform_3(%arg0: i32) -> (i32, i32) {
    %c0_i32 = arith.constant 0 : i32
    %c0_i32_0 = arith.constant 0 : i32
    %c0_i32_1 = arith.constant 0 : i32
    return %c0_i32, %c0_i32_0 : i32, i32
  }
  func.func @transform_4(%arg0: i32) -> (i32, i32) {
    %c0_i32 = arith.constant 0 : i32
    %c0_i32_0 = arith.constant 0 : i32
    %c0_i32_1 = arith.constant 0 : i32
    return %c0_i32, %c0_i32_0 : i32, i32
  }
  func.func @transform_5(%arg0: i32) -> (i32, i32) {
    %c0_i32 = arith.constant 0 : i32
    %c0_i32_0 = arith.constant 0 : i32
    return %arg0, %c0_i32 : i32, i32
  }
  func.func @transform_6(%arg0: i32) -> (i32, i32) {
    %c0_i32 = arith.constant 0 : i32
    %c0_i32_0 = arith.constant 0 : i32
    return %arg0, %c0_i32 : i32, i32
  }
}

</mosaic_0001>

<bundles_post_ra>
// kernel: tpu_custom_call.1
= control target key start
LH: loop header
LB: loop body
LE: loop exit
PB: predicated region body
PF: predicated region fallthrough
CT: control target
= control target key end

     0   :  { %12 = vsyncpa [#allocation3], 0  ;;  %v323_v3 = vmov 0.0|0.0   ;;  %vm324_vm0 = vmmov 0   ;;  %v325_v11 = vmov 0.0   ;;  %s422_s0 = inlined_call_operand.vmem [shape: f32[2,32], index: 0, kind: input, shape index: {}]   ;;  %s423_s1 = inlined_call_operand.vmem [shape: f32[32,8], index: 1, kind: input, shape index: {}]   ;;  %s424_s2 = inlined_call_operand.vmem [shape: f32[1,8], index: 2, kind: input, shape index: {}]   ;;  %s425_s3 = inlined_call_operand.vmem [shape: f32[32,8], index: 3, kind: input, shape index: {}]   ;;  %s426_s4 = inlined_call_operand.vmem [shape: f32[1,8], index: 4, kind: input, shape index: {}]   ;;  %s427_s5 = inlined_call_operand.hbm [shape: f32[2,8], index: 5, kind: output, shape index: {0}]   ;;  %s428_s6 = inlined_call_operand.hbm [shape: f32[2,8], index: 6, kind: output, shape index: {1}]  }
   0x1   :  { %v25_v0 = vld [vmem:[%s423_s1] sm:$0xff]  ;;  %v26_v1 = vld [vmem:[%s423_s1 + $0x8] sm:$0xff]  ;;  %258 = vmatprep.subr.bf16.mxu0 %v323_v3  ;;  %264 = vmatprep.subr.bf16.mxu1 %v323_v3  ;;  %v27_v6 = vld [vmem:[%s423_s1 + $0x10] sm:$0xff] }
   0x2   :  { %v110_v2 = vld [vmem:[%s425_s3] sm:$0xff]  ;;  %v259_v4 = vpack.c.bf16 %v26_v1, %v25_v0  ;;  %v111_v5 = vld [vmem:[%s425_s3 + $0x8] sm:$0xff]  ;;  %v28_v7 = vld [vmem:[%s423_s1 + $0x18] sm:$0xff]  ;;  %244 = vmatprep.mubr.msk.f32.mxu0 %vm324_vm0, %v325_v11  ;;  %255 = vmatprep.mubr.msk.f32.mxu1 %vm324_vm0, %v325_v11 }
   0x3   :  { %v265_v8 = vpack.c.bf16 %v111_v5, %v110_v2  ;;  %v112_v9 = vld [vmem:[%s425_s3 + $0x10] sm:$0xff]  ;;  %v113_v10 = vld [vmem:[%s425_s3 + $0x18] sm:$0xff]  ;;  %v262_v12 = vpack.c.bf16 %v28_v7, %v27_v6 }
   0x4   :  { %260 = vmatpush3.bf16.msra.mxu0 %v259_v4 }
   0x5   :  { %13 = vsyncpa [#allocation5], 0  ;;  %266 = vmatpush3.bf16.msra.mxu1 %v265_v8  ;;  %261 = vmatprep.subr.bf16.mxu0 %v323_v3  ;;  %v268_v13 = vpack.c.bf16 %v113_v10, %v112_v9  ;;  %v24_v14 = vld [vmem:[%s422_s0] sm:$0x3]  ;;  %vm36_vm1 = vcmask 261120   ;;  %s326_s15 = smov [#allocation2]  }
   0x6   :  { %267 = vmatprep.subr.bf16.mxu1 %v323_v3  ;;  %v222_v15 = vld [vmem:[%s424_s2] ss:$0 sm:$0xff]  ;;  %s200_s16 = sshll.u32 %s326_s15, 4  ;;  %s327_s19 = smov [#allocation4]   ;;  %vm191_vm2 = vcmask 58368   ;;  %s201_s16 = int_to_ptr.vmem [resolvable:$true] %s200_s16 }
   0x7   :  { %v224_v16 = vld [vmem:[%s426_s4] ss:$0 sm:$0xff]  ;;  %s210_s20 = sshll.u32 %s327_s19, 4  ;;  %s275_s0 = scalar_lea.vmem %s201_s16, 32  ;;  %s211_s20 = int_to_ptr.vmem [resolvable:$true] %s210_s20 }
   0x8   :  { %263 = vmatpush3.bf16.msra.mxu0 %v262_v12  ;;  %p276_p0 = scmp.ne.s32.totalorder %s201_s16, %s275_s0  ;;  %p280_p1 = scmp.lt.s32.totalorder %s201_s16, %s201_s16 }
   0x9   :  { %269 = vmatpush3.bf16.msra.mxu1 %v268_v13  ;;  %p281_p2 = scmp.lt.s32.totalorder %s275_s0, %s275_s0 }
   0xb   :  { %245 = vmatmul.mubr.msk.f32.vlgmr.msra.gmra.mrb[0].mxu0 %vm36_vm1, %v24_v14  ;;  %p282_p3 = por %p281_p2, %p280_p1 }
   0xc   :  { %256 = vmatmul.mubr.msk.f32.vlgmr.msra.gmra.mrb[0].mxu1 %vm36_vm1, %v24_v14 }
   0xd   :  { %p283_p4 = pnand %p282_p3, %p276_p0 }
  0xde   :  { %v106_v17 = vpop.f32.mrb[0].mxu0 }
  0xdf   :  { %v107_v18 = vadd.f32 %v222_v15, %v106_v17  ;;  %v187_v19 = vpop.f32.mrb[0].mxu1  ;;  %v246_v20 = vpop.f32.mrb[1].mxu0 }
  0xe0   :  { %v188_v21 = vadd.f32 %v224_v16, %v187_v19  ;;  %v257_v22 = vpop.f32.mrb[1].mxu1 }
  0xe1   :  { %192 = vst.msk [vmem:[#allocation2] sm:$0x3] %vm191_vm2, %v107_v18 }
  0xe2   :  { %286 = shalt.err (!%p283_p4)
}
  0xe3   :  { %s287_s21 = scalar_lea.hbm %s427_s5, 32 }
  0xe4   :  { %p288_p5 = scmp.ne.s32.totalorder %s427_s5, %s287_s21  ;;  %p291_p6 = scmp.lt.u32.totalorder %s287_s21, %s427_s5 }
  0xe6   :  { %p293_p7 = pnand %p291_p6, %p288_p5 }
  0xe8   :  { %296 = shalt.err (!%p293_p7)
}
  0xe9   :  { %203 = dma.vmem_to_hbm [thread:$0]  %s201_s16, 32, %s427_s5, [#allocation3]   ;;  %193 = vst.msk [vmem:[#allocation4] sm:$0x3] %vm191_vm2, %v188_v21 }
  0xea   :  { %s297_s28 = scalar_lea.vmem %s211_s20, 32  ;;  %p302_p9 = scmp.lt.s32.totalorder %s211_s20, %s211_s20 }
  0xeb   :  { %p298_p8 = scmp.ne.s32.totalorder %s211_s20, %s297_s28  ;;  %p303_p10 = scmp.lt.s32.totalorder %s297_s28, %s297_s28 }
  0xed   :  { %p304_p11 = por %p303_p10, %p302_p9 }
  0xef   :  { %p305_p12 = pnand %p304_p11, %p298_p8 }
  0xf1   :  { %308 = shalt.err (!%p305_p12)
}
  0xf2   :  { %s309_s7 = scalar_lea.hbm %s428_s6, 32 }
  0xf3   :  { %p310_p13 = scmp.ne.s32.totalorder %s428_s6, %s309_s7  ;;  %p313_p0 = scmp.lt.u32.totalorder %s309_s7, %s428_s6 }
  0xf5   :  { %p315_p1 = pnand %p313_p0, %p310_p13 }
  0xf7   :  { %318 = shalt.err (!%p315_p1)
}
  0xf8   :  { %213 = dma.vmem_to_hbm [thread:$0]  %s211_s20, 32, %s428_s6, [#allocation5]  }
  0xf9   :  { %319 = dma.done.wait [#allocation3], 32  }
  0xfa   :  { %320 = vsyncadd [#allocation3], 4294967264 }
  0xfb   :  { %321 = dma.done.wait [#allocation5], 32  }
  0xfc   :  { %322 = vsyncadd [#allocation5], 4294967264 }
  0xfd   :  { %220 = vsyncpa [#allocation3], 1 }
  0xfe   :  { %221 = vsyncpa [#allocation5], 1 }

</bundles_post_ra>
